<compile_context>
chip_gen: v7x
topology: tpu7x:2x2x1
jax: 0.10.0
libtpu: 0.0.40
codegen_flags: <defaults>
</compile_context>

<pallas_src>
import jax
import jax.numpy as jnp
from jax.experimental import pallas as pl
from jax.experimental.pallas import tpu as pltpu

# ----- synthetic "conf" -----
NUM_USERS = 12
NUM_ITEMS = 15
EMB_DIM = 32          # conf.embedding_dim
FM_K = 10             # fm_V factor count
AVG_RATING = 3.5      # conf.avg_rating
BATCH = 8


def decoder_fm_kernel(user_ref, item_ref, u_out_ref, i_out_ref,
                      uemb_ref, iemb_ref, bu_ref, bi_ref,
                      fmv_ref, fcw_ref, fcb_ref, o_ref):
    """Fused decoder_fm forward (single invocation, no grid).

    user/item : VMEM int32 (B, 1)     gather indices
    u_out/i_out: VMEM f32 (B, D)      zero-scaled residual inputs (semantics only)
    uemb/iemb : VMEM f32 (NU/NI, D)   embedding tables (gathered in-kernel via one-hot MXU)
    bu/bi     : VMEM f32 (NU/NI, 1)   per-user / per-item bias tables
    fmv       : VMEM f32 (2D, K)      FM factor matrix
    fcw       : VMEM f32 (2D, 1)      linear head weight
    fcb       : SMEM f32 (1,)         linear head bias
    o         : VMEM f32 (B, 1)
    """
    B = user_ref.shape[0]
    NU, D = uemb_ref.shape
    NI = iemb_ref.shape[0]

    # 1) One-hot gathers on the (idle) MXU: no per-row DMAs, no semaphores, no scalar loops.
    onehot_u = (jax.lax.broadcasted_iota(jnp.int32, (B, NU), 1)
                == user_ref[...]).astype(jnp.float32)                    # (B, NU)
    onehot_i = (jax.lax.broadcasted_iota(jnp.int32, (B, NI), 1)
                == item_ref[...]).astype(jnp.float32)                    # (B, NI)

    # 2) `0.0 * u_out + emb[user]` kept in-kernel for exact module semantics.
    xu = 0.0 * u_out_ref[...] + jnp.dot(onehot_u, uemb_ref[...],
                                        preferred_element_type=jnp.float32)   # (B, D)
    xi = 0.0 * i_out_ref[...] + jnp.dot(onehot_i, iemb_ref[...],
                                        preferred_element_type=jnp.float32)   # (B, D)
    # dropout: identity (eval-mode semantics).
    # TODO(synk): training-mode dropout (random mask + 1/(1-p) scaling) not implemented.

    # 3) Per-row scalar bias gathered with the same one-hots (nothing left in the wrapper).
    bias = (jnp.dot(onehot_u, bu_ref[...], preferred_element_type=jnp.float32)
            + jnp.dot(onehot_i, bi_ref[...], preferred_element_type=jnp.float32)
            + fcb_ref[0] + AVG_RATING)                                    # (B, 1)

    # 4) FM contraction with static (zero-cost) sublane views of the user/item halves
    #    of fm_V / fc_w -> no activation concat, no wrapper weight prep.
    vu = fmv_ref[:D, :]
    vi = fmv_ref[D:, :]
    t = (jnp.dot(xu, vu, preferred_element_type=jnp.float32)
         + jnp.dot(xi, vi, preferred_element_type=jnp.float32))           # (B, K)
    tsq = (jnp.dot(xu * xu, vu * vu, preferred_element_type=jnp.float32)
           + jnp.dot(xi * xi, vi * vi, preferred_element_type=jnp.float32))
    lin = (jnp.dot(xu, fcw_ref[:D, :], preferred_element_type=jnp.float32)
           + jnp.dot(xi, fcw_ref[D:, :], preferred_element_type=jnp.float32))  # (B, 1)

    fm = 0.5 * jnp.sum(t * t - tsq, axis=1, keepdims=True)                # (B, 1)
    o_ref[...] = fm + lin + bias


def init_params(key):
    dim = 2 * EMB_DIM
    k = jax.random.split(key, 6)
    # xavier_normal_ for embeddings: std = sqrt(2 / (fan_in + fan_out))
    std_u = (2.0 / (NUM_USERS + EMB_DIM)) ** 0.5
    std_i = (2.0 / (NUM_ITEMS + EMB_DIM)) ** 0.5
    return dict(
        user_emb=std_u * jax.random.normal(k[0], (NUM_USERS, EMB_DIM), jnp.float32),
        item_emb=std_i * jax.random.normal(k[1], (NUM_ITEMS, EMB_DIM), jnp.float32),
        fc_w=jax.random.uniform(k[2], (dim, 1), jnp.float32, -0.05, 0.05),
        fc_b=jnp.zeros((1,), jnp.float32),
        fm_V=jax.random.uniform(k[3], (dim, FM_K), jnp.float32, -0.05, 0.05),
        b_users=jax.random.uniform(k[4], (NUM_USERS, 1), jnp.float32, 0.0, 0.1),
        b_items=jax.random.uniform(k[5], (NUM_ITEMS, 1), jnp.float32, 0.0, 0.1),
    )


def decoder_fm_forward(params, user, item, u_out, i_out):
    B = user.shape[0]
    user2d = user.reshape(B, 1).astype(jnp.int32)
    item2d = item.reshape(B, 1).astype(jnp.int32)

    vmem = pl.BlockSpec(memory_space=pltpu.MemorySpace.VMEM)
    smem = pl.BlockSpec(memory_space=pltpu.MemorySpace.SMEM)

    out = pl.pallas_call(
        decoder_fm_kernel,
        out_shape=jax.ShapeDtypeStruct((B, 1), jnp.float32),
        in_specs=[vmem, vmem,          # user, item indices
                  vmem, vmem,          # u_out, i_out
                  vmem, vmem,          # user_emb, item_emb
                  vmem, vmem,          # b_users, b_items
                  vmem, vmem,          # fm_V, fc_w
                  smem],               # fc_b
        out_specs=vmem,
    )(user2d, item2d, u_out, i_out,
      params["user_emb"], params["item_emb"],
      params["b_users"], params["b_items"],
      params["fm_V"], params["fc_w"], params["fc_b"])
    return out[:, 0]                                  # squeeze(1) -> (B,)


def decoder_fm_reference(params, user, item, u_out, i_out):
    u_emb = 0.0 * u_out + params["user_emb"][user]
    i_emb = 0.0 * i_out + params["item_emb"][item]
    x = jnp.concatenate([u_emb, i_emb], axis=1)
    lin = x @ params["fc_w"] + params["fc_b"][0]
    t1 = jnp.square(x @ params["fm_V"])
    t2 = jnp.square(x) @ jnp.square(params["fm_V"])
    fm = 0.5 * jnp.sum(t1 - t2, axis=1, keepdims=True)
    out = fm + lin + params["b_users"][user] + params["b_items"][item] + AVG_RATING
    return out[:, 0]


if __name__ == "__main__":
    key = jax.random.PRNGKey(0)
    kp, ku, ki, kuo, kio = jax.random.split(key, 5)

    params = init_params(kp)
    user = jax.random.randint(ku, (BATCH,), 0, NUM_USERS, dtype=jnp.int32)
    item = jax.random.randint(ki, (BATCH,), 0, NUM_ITEMS, dtype=jnp.int32)
    u_out = jax.random.normal(kuo, (BATCH, EMB_DIM), jnp.float32)
    i_out = jax.random.normal(kio, (BATCH, EMB_DIM), jnp.float32)

    fwd = jax.jit(decoder_fm_forward)
    pred = jax.block_until_ready(fwd(params, user, item, u_out, i_out))

    ref = decoder_fm_reference(params, user, item, u_out, i_out)
    assert pred.shape == (BATCH,)
    assert jnp.allclose(pred, ref, atol=1e-4, rtol=1e-4), (pred, ref)
    print("KERNEL_OK")
</pallas_src>

<mosaic_0001>
module attributes {stable_mosaic.version = 11 : i64} {
  func.func @decoder_fm_kernel(%arg0: memref<8x1xi32, #tpu.memory_space<vmem>>, %arg1: memref<8x1xi32, #tpu.memory_space<vmem>>, %arg2: memref<8x32xf32, #tpu.memory_space<vmem>>, %arg3: memref<8x32xf32, #tpu.memory_space<vmem>>, %arg4: memref<12x32xf32, #tpu.memory_space<vmem>>, %arg5: memref<15x32xf32, #tpu.memory_space<vmem>>, %arg6: memref<12x1xf32, #tpu.memory_space<vmem>>, %arg7: memref<15x1xf32, #tpu.memory_space<vmem>>, %arg8: memref<64x10xf32, #tpu.memory_space<vmem>>, %arg9: memref<64x1xf32, #tpu.memory_space<vmem>>, %arg10: memref<1xf32, #tpu.memory_space<smem>>, %arg11: memref<8x1xf32, #tpu.memory_space<vmem>>) attributes {dimension_semantics = [], scalar_prefetch = 0 : i64, scratch_operands = 0 : i64, tpu.core_type = #tpu.core_type<tc>} {
    %0 = tpu.iota {dimensions = array<i32: 1>} : vector<8x12xi32>
    %c0 = arith.constant 0 : index
    %c0_0 = arith.constant 0 : index
    %1 = vector.load %arg0[%c0, %c0_0] : memref<8x1xi32, #tpu.memory_space<vmem>>, vector<8x1xi32>
    %2 = vector.broadcast %1 : vector<8x1xi32> to vector<8x12xi32>
    %3 = arith.cmpi eq, %0, %2 : vector<8x12xi32>
    %4 = arith.extui %3 : vector<8x12xi1> to vector<8x12xi32>
    %5 = arith.sitofp %4 : vector<8x12xi32> to vector<8x12xf32>
    %6 = tpu.iota {dimensions = array<i32: 1>} : vector<8x15xi32>
    %c0_1 = arith.constant 0 : index
    %c0_2 = arith.constant 0 : index
    %7 = vector.load %arg1[%c0_1, %c0_2] : memref<8x1xi32, #tpu.memory_space<vmem>>, vector<8x1xi32>
    %8 = vector.broadcast %7 : vector<8x1xi32> to vector<8x15xi32>
    %9 = arith.cmpi eq, %6, %8 : vector<8x15xi32>
    %10 = arith.extui %9 : vector<8x15xi1> to vector<8x15xi32>
    %11 = arith.sitofp %10 : vector<8x15xi32> to vector<8x15xf32>
    %c0_3 = arith.constant 0 : index
    %c0_4 = arith.constant 0 : index
    %12 = vector.load %arg2[%c0_3, %c0_4] : memref<8x32xf32, #tpu.memory_space<vmem>>, vector<8x32xf32>
    %cst = arith.constant 0.000000e+00 : f32
    %13 = vector.broadcast %cst : f32 to vector<8x32xf32>
    %14 = arith.mulf %13, %12 : vector<8x32xf32>
    %c0_5 = arith.constant 0 : index
    %c0_6 = arith.constant 0 : index
    %15 = vector.load %arg4[%c0_5, %c0_6] : memref<12x32xf32, #tpu.memory_space<vmem>>, vector<12x32xf32>
    %cst_7 = arith.constant dense<0.000000e+00> : vector<8x32xf32>
    %16 = tpu.matmul %5, %15, %cst_7 {dimension_numbers = #tpu.dot_dimension_numbers<[1], [0], [0], [1], [0, 0, 1, 1], [], []>} : vector<8x12xf32>, vector<12x32xf32>, vector<8x32xf32> -> vector<8x32xf32>
    %17 = arith.addf %14, %16 : vector<8x32xf32>
    %c0_8 = arith.constant 0 : index
    %c0_9 = arith.constant 0 : index
    %18 = vector.load %arg3[%c0_8, %c0_9] : memref<8x32xf32, #tpu.memory_space<vmem>>, vector<8x32xf32>
    %cst_10 = arith.constant 0.000000e+00 : f32
    %19 = vector.broadcast %cst_10 : f32 to vector<8x32xf32>
    %20 = arith.mulf %19, %18 : vector<8x32xf32>
    %c0_11 = arith.constant 0 : index
    %c0_12 = arith.constant 0 : index
    %21 = vector.load %arg5[%c0_11, %c0_12] : memref<15x32xf32, #tpu.memory_space<vmem>>, vector<15x32xf32>
    %cst_13 = arith.constant dense<0.000000e+00> : vector<8x32xf32>
    %22 = tpu.matmul %11, %21, %cst_13 {dimension_numbers = #tpu.dot_dimension_numbers<[1], [0], [0], [1], [0, 0, 1, 1], [], []>} : vector<8x15xf32>, vector<15x32xf32>, vector<8x32xf32> -> vector<8x32xf32>
    %23 = arith.addf %20, %22 : vector<8x32xf32>
    %c0_14 = arith.constant 0 : index
    %c0_15 = arith.constant 0 : index
    %24 = vector.load %arg6[%c0_14, %c0_15] : memref<12x1xf32, #tpu.memory_space<vmem>>, vector<12x1xf32>
    %cst_16 = arith.constant dense<0.000000e+00> : vector<8x1xf32>
    %25 = tpu.matmul %5, %24, %cst_16 {dimension_numbers = #tpu.dot_dimension_numbers<[1], [0], [0], [1], [0, 0, 1, 1], [], []>} : vector<8x12xf32>, vector<12x1xf32>, vector<8x1xf32> -> vector<8x1xf32>
    %c0_17 = arith.constant 0 : index
    %c0_18 = arith.constant 0 : index
    %26 = vector.load %arg7[%c0_17, %c0_18] : memref<15x1xf32, #tpu.memory_space<vmem>>, vector<15x1xf32>
    %cst_19 = arith.constant dense<0.000000e+00> : vector<8x1xf32>
    %27 = tpu.matmul %11, %26, %cst_19 {dimension_numbers = #tpu.dot_dimension_numbers<[1], [0], [0], [1], [0, 0, 1, 1], [], []>} : vector<8x15xf32>, vector<15x1xf32>, vector<8x1xf32> -> vector<8x1xf32>
    %28 = arith.addf %25, %27 : vector<8x1xf32>
    %c0_20 = arith.constant 0 : index
    %29 = memref.load %arg10[%c0_20] : memref<1xf32, #tpu.memory_space<smem>>
    %30 = vector.broadcast %29 : f32 to vector<8x1xf32>
    %31 = arith.addf %28, %30 : vector<8x1xf32>
    %cst_21 = arith.constant 3.500000e+00 : f32
    %32 = vector.broadcast %cst_21 : f32 to vector<8x1xf32>
    %33 = arith.addf %31, %32 : vector<8x1xf32>
    %c0_22 = arith.constant 0 : index
    %c0_23 = arith.constant 0 : index
    %34 = vector.load %arg8[%c0_22, %c0_23] : memref<64x10xf32, #tpu.memory_space<vmem>>, vector<32x10xf32>
    %c32 = arith.constant 32 : index
    %c0_24 = arith.constant 0 : index
    %35 = vector.load %arg8[%c32, %c0_24] : memref<64x10xf32, #tpu.memory_space<vmem>>, vector<32x10xf32>
    %cst_25 = arith.constant dense<0.000000e+00> : vector<8x10xf32>
    %36 = tpu.matmul %17, %34, %cst_25 {dimension_numbers = #tpu.dot_dimension_numbers<[1], [0], [0], [1], [0, 0, 1, 1], [], []>} : vector<8x32xf32>, vector<32x10xf32>, vector<8x10xf32> -> vector<8x10xf32>
    %cst_26 = arith.constant dense<0.000000e+00> : vector<8x10xf32>
    %37 = tpu.matmul %23, %35, %cst_26 {dimension_numbers = #tpu.dot_dimension_numbers<[1], [0], [0], [1], [0, 0, 1, 1], [], []>} : vector<8x32xf32>, vector<32x10xf32>, vector<8x10xf32> -> vector<8x10xf32>
    %38 = arith.addf %36, %37 : vector<8x10xf32>
    %39 = arith.mulf %17, %17 : vector<8x32xf32>
    %40 = arith.mulf %34, %34 : vector<32x10xf32>
    %cst_27 = arith.constant dense<0.000000e+00> : vector<8x10xf32>
    %41 = tpu.matmul %39, %40, %cst_27 {dimension_numbers = #tpu.dot_dimension_numbers<[1], [0], [0], [1], [0, 0, 1, 1], [], []>} : vector<8x32xf32>, vector<32x10xf32>, vector<8x10xf32> -> vector<8x10xf32>
    %42 = arith.mulf %23, %23 : vector<8x32xf32>
    %43 = arith.mulf %35, %35 : vector<32x10xf32>
    %cst_28 = arith.constant dense<0.000000e+00> : vector<8x10xf32>
    %44 = tpu.matmul %42, %43, %cst_28 {dimension_numbers = #tpu.dot_dimension_numbers<[1], [0], [0], [1], [0, 0, 1, 1], [], []>} : vector<8x32xf32>, vector<32x10xf32>, vector<8x10xf32> -> vector<8x10xf32>
    %45 = arith.addf %41, %44 : vector<8x10xf32>
    %c0_29 = arith.constant 0 : index
    %c0_30 = arith.constant 0 : index
    %46 = vector.load %arg9[%c0_29, %c0_30] : memref<64x1xf32, #tpu.memory_space<vmem>>, vector<32x1xf32>
    %cst_31 = arith.constant dense<0.000000e+00> : vector<8x1xf32>
    %47 = tpu.matmul %17, %46, %cst_31 {dimension_numbers = #tpu.dot_dimension_numbers<[1], [0], [0], [1], [0, 0, 1, 1], [], []>} : vector<8x32xf32>, vector<32x1xf32>, vector<8x1xf32> -> vector<8x1xf32>
    %c32_32 = arith.constant 32 : index
    %c0_33 = arith.constant 0 : index
    %48 = vector.load %arg9[%c32_32, %c0_33] : memref<64x1xf32, #tpu.memory_space<vmem>>, vector<32x1xf32>
    %cst_34 = arith.constant dense<0.000000e+00> : vector<8x1xf32>
    %49 = tpu.matmul %23, %48, %cst_34 {dimension_numbers = #tpu.dot_dimension_numbers<[1], [0], [0], [1], [0, 0, 1, 1], [], []>} : vector<8x32xf32>, vector<32x1xf32>, vector<8x1xf32> -> vector<8x1xf32>
    %50 = arith.addf %47, %49 : vector<8x1xf32>
    %51 = arith.mulf %38, %38 : vector<8x10xf32>
    %52 = arith.subf %51, %45 : vector<8x10xf32>
    %cst_35 = arith.constant dense<0.000000e+00> : vector<8xf32>
    %53 = vector.multi_reduction <add>, %52, %cst_35 [1] : vector<8x10xf32> to vector<8xf32>
    %54 = vector.shape_cast %53 : vector<8xf32> to vector<8x1xf32>
    %cst_36 = arith.constant 5.000000e-01 : f32
    %55 = vector.broadcast %cst_36 : f32 to vector<8x1xf32>
    %56 = arith.mulf %55, %54 : vector<8x1xf32>
    %57 = arith.addf %56, %50 : vector<8x1xf32>
    %58 = arith.addf %57, %33 : vector<8x1xf32>
    %c0_37 = arith.constant 0 : index
    %c0_38 = arith.constant 0 : index
    %59 = vector.load %arg11[%c0_37, %c0_38] : memref<8x1xf32, #tpu.memory_space<vmem>>, vector<8x1xf32>
    tpu.vector_store %arg11[%c0_37, %c0_38], %58 {strides = array<i32>} : memref<8x1xf32, #tpu.memory_space<vmem>>, vector<8x1xf32>,
    return
  }
}

</mosaic_0001>

<bundles_post_ra>
// kernel: decoder_fm_forward.1
= control target key start
LH: loop header
LB: loop body
LE: loop exit
PB: predicated region body
PF: predicated region fallthrough
CT: control target
= control target key end

     0   :  { %vm63_vm0 = vcmask 1043456   ;;  %v1071_v0 = vmov 0   ;;  %v1072_v2 = vmov 0.0|0.0   ;;  %vm146_vm1 = vcmask 1046528   ;;  %s1308_s0 = inlined_call_operand.vmem [shape: s32[8,1], index: 0, kind: input, shape index: {}]   ;;  %s1309_s1 = inlined_call_operand.vmem [shape: s32[8,1], index: 1, kind: input, shape index: {}]   ;;  %s1310_s4 = inlined_call_operand.vmem [shape: f32[12,32], index: 4, kind: input, shape index: {}]   ;;  %s1311_s7 = inlined_call_operand.vmem [shape: f32[15,1], index: 7, kind: input, shape index: {}]   ;;  %s1312_s5 = inlined_call_operand.vmem [shape: f32[15,32], index: 5, kind: input, shape index: {}]   ;;  %s1313_s6 = inlined_call_operand.vmem [shape: f32[12,1], index: 6, kind: input, shape index: {}]   ;;  %s1314_s8 = inlined_call_operand.vmem [shape: f32[64,10], index: 8, kind: input, shape index: {}]   ;;  %s1315_s2 = inlined_call_operand.vmem [shape: f32[8,32], index: 2, kind: input, shape index: {}]   ;;  %s1316_s3 = inlined_call_operand.vmem [shape: f32[8,32], index: 3, kind: input, shape index: {}]   ;;  %s1317_s9 = inlined_call_operand.vmem [shape: f32[64,1], index: 9, kind: input, shape index: {}]   ;;  %s1318_s10 = inlined_call_operand.<no memory space> [shape: f32[1], index: 10, kind: input, shape index: {}]   ;;  %s1319_s11 = inlined_call_operand.vmem [shape: f32[8,1], index: 11, kind: output, shape index: {}]  }
   0x1   :  { %1070 = vset.pattern.permute.xlu0 %v1071_v0  ;;  %v41_v1 = vld [vmem:[%s1308_s0] sm:$0xff]  ;;  %1001 = vmatprep.subr.bf16.mxu1 %v1072_v2  ;;  %v58_v4 = vld [vmem:[%s1310_s4 + $0x8] sm:$0xf]  ;;  %vm1073_vm2 = vmmov 1   ;;  %vm1074_vm4 = vmmov 0   ;;  %v1075_v8 = vmov 0.0   ;;  %v39_v13 = vlaneseq }
   0x2   :  { %v57_v3 = vld [vmem:[%s1310_s4] sm:$0xff]  ;;  %43 = vperm.xlu0 %1070, %v41_v1   ;;  %vm1146_vm3 = vmpackc.low %vm63_vm0, %vm1073_vm2  ;;  %1009 = vmatprep.subr.bf16.mxu0 %v1072_v2  ;;  %v224_v11 = vld [vmem:[%s1311_s7 + $0x8] sm:$0x7f]  ;;  %vm59_vm6 = vcmask 97280   ;;  %vm142_vm8 = vcmask 121856   ;;  %vm383_vm10 = vcmask 261120  }
   0x3   :  { %v48_v6 = vld [vmem:[%s1309_s1] sm:$0xff]  ;;  %v1002_v7 = vpack.c.bf16 %v58_v4, %v57_v3  ;;  %911 = vmatprep.mubr.msk.f32.mxu1 %vm1074_vm4, %v1075_v8  ;;  %925 = vmatprep.mubr.msk.f32.mxu0 %vm1074_vm4, %v1075_v8  ;;  %vm1161_vm5 = vmpackc.low %vm146_vm1, %vm1073_vm2  ;;  %v40_v14 = vand.u32 127, %v39_v13  ;;  %v141_v16 = vld [vmem:[%s1312_s5 + $0x8] sm:$0x7f]  ;;  %vm836_vm11 = vcmask 80896   ;;  %vm843_vm12 = vcmask 7168  }
   0x4   :  { %v223_v9 = vld [vmem:[%s1311_s7] sm:$0xff]  ;;  %v222_v20 = vld [vmem:[%s1313_s6 + $0x8] sm:$0xf]  ;;  %v377_v33 = vld [vmem:[%s1314_s8 + $0x10] sm:$0xff] }
   0x5   :  { %1004 = vmatpush3.bf16.msk.msra.mxu1 %vm1146_vm3, %v1002_v7  ;;  %v1010_v12 = vpack.c.bf16 %v224_v11, %v223_v9  ;;  %v140_v15 = vld [vmem:[%s1312_s5] sm:$0xff]  ;;  %v1195_v23 = vld [vmem:[%s1314_s8 + $0x28] sm:$0xff]  ;;  %v378_v34 = vld [vmem:[%s1314_s8 + $0x18] sm:$0xff]  ;;  %v533_v35 = vmul.f32 %v377_v33, %v377_v33 }
   0x6   :  { %50 = vperm.xlu0 %1070, %v48_v6   ;;  %1005 = vmatprep.subr.bf16.mxu1 %v1072_v2  ;;  %v1006_v18 = vpack.c.bf16 %v141_v16, %v140_v15  ;;  %v221_v19 = vld [vmem:[%s1313_s6] sm:$0xff]  ;;  %v1210_v27 = vld [vmem:[%s1314_s8 + $0x8] sm:$0xff]  ;;  %v534_v36 = vmul.f32 %v378_v34, %v378_v34  ;;  %v381_v38 = vld [vmem:[%s1314_s8 + $0x30] sm:$0xff]  ;;  %v1027_v41 = vpack.c.bf16 %v378_v34, %v377_v33 }
   0x7   :  { %1012 = vmatpush3.bf16.msk.msra.mxu0 %vm1161_vm5, %v1010_v12  ;;  %v1190_v22 = vld [vmem:[%s1314_s8 + $0x20] sm:$0xff]  ;;  %v1014_v25 = vpack.c.bf16 %v222_v20, %v221_v19  ;;  %v532_v31 = vmul.f32 %v1210_v27, %v1210_v27  ;;  %v382_v39 = vld [vmem:[%s1314_s8 + $0x38] sm:$0xff]  ;;  %v538_v42 = vmul.f32 %v381_v38, %v381_v38  ;;  %v691_v49 = vld [vmem:[%s1317_s9 + $0x28] sm:$0xff]  ;;  %v537_v3 = vmul.f32 %v1195_v23, %v1195_v23 }
   0x8   :  { %1013 = vmatprep.subr.bf16.mxu0 %v1072_v2  ;;  %v1205_v26 = vld [vmem:[%s1314_s8] sm:$0xff]  ;;  %v1018_v28 = vpack.c.bf16 %v1195_v23, %v1190_v22  ;;  %v1039_v37 = vpack.c.bf16 %v534_v36, %v533_v35  ;;  %v1021_v40 = vpack.c.bf16 %v382_v39, %v381_v38  ;;  %v539_v43 = vmul.f32 %v382_v39, %v382_v39  ;;  %v692_v56 = vld [vmem:[%s1317_s9 + $0x30] sm:$0xff]  ;;  %v693_v57 = vld [vmem:[%s1317_s9 + $0x38] sm:$0xff] }
   0x9   :  { %v531_v30 = vmul.f32 %v1205_v26, %v1205_v26  ;;  %v55_v45 = vld [vmem:[%s1315_s2] sm:$0xff]  ;;  %v1024_v59 = vpack.c.bf16 %v1210_v27, %v1205_v26  ;;  %v1045_v62 = vpack.c.bf16 %v693_v57, %v692_v56  ;;  %v687_v0 = vld [vmem:[%s1317_s9 + $0x8] sm:$0xff]  ;;  %v536_v1 = vmul.f32 %v1190_v22, %v1190_v22  ;;  %v688_v5 = vld [vmem:[%s1317_s9 + $0x10] sm:$0xff] }
   0xa   :  { %v1033_v44 = vpack.c.bf16 %v539_v43, %v538_v42  ;;  %v56_v46 = vmul.f32 0.0, %v55_v45  ;;  %v138_v47 = vld [vmem:[%s1316_s3] sm:$0xff]  ;;  %v689_v6 = vld [vmem:[%s1317_s9 + $0x18] sm:$0xff] }
   0xb   :  { %v1036_v32 = vpack.c.bf16 %v532_v31, %v531_v30  ;;  %v690_v48 = vld [vmem:[%s1317_s9 + $0x20] sm:$0xff]  ;;  %v139_v53 = vmul.f32 0.0, %v138_v47  ;;  %v1030_v7 = vpack.c.bf16 %v537_v3, %v536_v1  ;;  %v1051_v9 = vpack.c.bf16 %v689_v6, %v688_v5 }
   0xc   :  { %v1042_v54 = vpack.c.bf16 %v691_v49, %v690_v48  ;;  %v686_v63 = vld [vmem:[%s1317_s9] sm:$0xff] }
   0xd   :  { %v1048_v4 = vpack.c.bf16 %v687_v0, %v686_v63 }
  0x81   :  { %v44_v17 = vpop.permute.xlu0 %43 }
  0x82   :  { %vm45_vm7 = vcmp.eq.s32.totalorder %v40_v14, %v44_v17 }
  0x83   :  { %v849_v21 = vsel %vm45_vm7, 1.0, %v1075_v8 }
  0x84   :  { %912 = vmatmul.mubr.msk.f32.vlgmr.msra.gmra.mrb[0].mxu1 %vm59_vm6, %v849_v21 }
  0x85   :  { %1008 = vmatpush3.bf16.msk.msra.mxu1 %vm1161_vm5, %v1006_v18  ;;  %v51_v24 = vpop.permute.xlu0 %50  ;;  %918 = vmatprep.mubr.msk.f32.mxu1 %vm1074_vm4, %v1075_v8 }
  0x86   :  { %vm52_vm9 = vcmp.eq.s32.totalorder %v40_v14, %v51_v24  ;;  %1017 = vmatprep.subr.bf16.mxu1 %v1072_v2 }
  0x87   :  { %v850_v29 = vsel %vm52_vm9, 1.0, %v1075_v8 }
  0x88   :  { %919 = vmatmul.mubr.msk.f32.vlgmr.msra.gmra.mrb[2].mxu1 %vm142_vm8, %v850_v29  ;;  %926 = vmatmul.mubr.msk.f32.vlgmr.msra.gmra.mrb[0].mxu0 %vm142_vm8, %v850_v29 }
  0x89   :  { %1016 = vmatpush3.bf16.msk.msra.mxu0 %vm1146_vm3, %v1014_v25  ;;  %932 = vmatprep.mubr.msk.f32.mxu0 %vm1074_vm4, %v1075_v8 }
  0x8a   :  { %1035 = vmatprep.subr.bf16.mxu0 %v1072_v2  ;;  %1019 = vmatpush3.bf16.msra.mxu1 %v1018_v28 }
  0x8b   :  { %1020 = vmatprep.subr.bf16.mxu1 %v1072_v2  ;;  %943 = vmatprep.mubr.msk.f32.mxu1 %vm1074_vm4, %v1075_v8 }
  0x8e   :  { %1022 = vmatpush3.bf16.msra.mxu1 %v1021_v40 }
  0x8f   :  { %1023 = vmatprep.subr.bf16.mxu1 %v1072_v2 }
  0x90   :  { %933 = vmatmul.mubr.msk.f32.vlgmr.msra.gmra.mrb[0].mxu0 %vm59_vm6, %v849_v21  ;;  %v372_v21 = vstv %s1318_s10 }
  0x91   :  { %1037 = vmatpush3.bf16.msra.mxu0 %v1036_v32  ;;  %976 = vmatprep.mubr.msk.f32.mxu0 %vm1074_vm4, %v1075_v8  ;;  %v1053_v22 = vadd.f32 3.5, %v372_v21 }
  0x92   :  { %1038 = vmatprep.subr.bf16.mxu0 %v1072_v2 }
  0x95   :  { %1040 = vmatpush3.bf16.msra.mxu0 %v1039_v37 }
  0x96   :  { %1041 = vmatprep.subr.bf16.mxu0 %v1072_v2 }
 0x157   :  { %v133_v50 = vpop.f32.mrb[0].mxu1 }
 0x158   :  { %v137_v51 = vadd.f32 %v133_v50, %v56_v46  ;;  %v913_v52 = vpop.f32.mrb[1].mxu1 }
 0x15a   :  { %v530_v55 = vmul.f32 %v137_v51, %v137_v51 }
 0x15b   :  { %v216_v58 = vpop.f32.mrb[2].mxu1 }
 0x15c   :  { %v220_v60 = vadd.f32 %v216_v58, %v139_v53  ;;  %v920_v61 = vpop.f32.mrb[3].mxu1  ;;  %977 = vmatmul.mubr.msk.f32.vlgmr.msra.gmra.mrb[2].mxu0 %vm383_vm10, %v530_v55 }
 0x15d   :  { %1043 = vmatpush3.bf16.msra.mxu0 %v1042_v54  ;;  %987 = vmatprep.mubr.msk.f32.mxu0 %vm1074_vm4, %v1075_v8 }
 0x15e   :  { %944 = vmatmul.mubr.msk.f32.vlgmr.msra.gmra.mrb[4].mxu1 %vm383_vm10, %v220_v60  ;;  %1044 = vmatprep.subr.bf16.mxu0 %v1072_v2  ;;  %v535_v10 = vmul.f32 %v220_v60, %v220_v60 }
 0x15f   :  { %1025 = vmatpush3.bf16.msra.mxu1 %v1024_v59  ;;  %954 = vmatprep.mubr.msk.f32.mxu1 %vm1074_vm4, %v1075_v8 }
 0x160   :  { %1026 = vmatprep.subr.bf16.mxu1 %v1072_v2 }
 0x161   :  { %1046 = vmatpush3.bf16.msra.mxu0 %v1045_v62 }
 0x162   :  { %1047 = vmatprep.subr.bf16.mxu0 %v1072_v2 }
 0x163   :  { %1028 = vmatpush3.bf16.msra.mxu1 %v1027_v41 }
 0x164   :  { %988 = vmatmul.mubr.msk.f32.vlgmr.msra.gmra.mrb[0].mxu0 %vm383_vm10, %v220_v60  ;;  %1029 = vmatprep.subr.bf16.mxu1 %v1072_v2 }
 0x165   :  { %1049 = vmatpush3.bf16.msra.mxu0 %v1048_v4  ;;  %998 = vmatprep.mubr.msk.f32.mxu0 %vm1074_vm4, %v1075_v8 }
 0x166   :  { %955 = vmatmul.mubr.msk.f32.vlgmr.msra.gmra.mrb[4].mxu1 %vm383_vm10, %v137_v51  ;;  %1050 = vmatprep.subr.bf16.mxu0 %v1072_v2 }
 0x167   :  { %1031 = vmatpush3.bf16.msra.mxu1 %v1030_v7  ;;  %965 = vmatprep.mubr.msk.f32.mxu1 %vm1074_vm4, %v1075_v8 }
 0x168   :  { %1032 = vmatprep.subr.bf16.mxu1 %v1072_v2 }
 0x169   :  { %1052 = vmatpush3.bf16.msra.mxu0 %v1051_v9 }
 0x16b   :  { %1034 = vmatpush3.bf16.msra.mxu1 %v1033_v44 }
 0x16c   :  { %999 = vmatmul.mubr.msk.f32.vlgmr.msra.gmra.mrb[0].mxu0 %vm383_vm10, %v137_v51 }
 0x16e   :  { %966 = vmatmul.mubr.msk.f32.vlgmr.msra.gmra.mrb[6].mxu1 %vm383_vm10, %v535_v10 }
 0x22f   :  { %v682_v11 = vpop.f32.mrb[2].mxu0 }
 0x230   :  { %v978_v12 = vpop.f32.mrb[3].mxu0 }
 0x239   :  { %v526_v13 = vpop.f32.mrb[4].mxu1 }
 0x23a   :  { %v956_v14 = vpop.f32.mrb[5].mxu1  ;;  %v834_v18 = vmul.f32 %v526_v13, %v526_v13 }
 0x23f   :  { %v830_v15 = vpop.f32.mrb[0].mxu0 }
 0x240   :  { %v1000_v16 = vpop.f32.mrb[1].mxu0  ;;  %v1054_v24 = vadd.f32 %v1053_v22, %v830_v15 }
 0x241   :  { %v609_v17 = vpop.f32.mrb[6].mxu1 }
 0x242   :  { %v683_v19 = vadd.f32 %v682_v11, %v609_v17  ;;  %v967_v20 = vpop.f32.mrb[7].mxu1 }
 0x244   :  { %v835_v8 = vsub.f32 %v834_v18, %v683_v19 }
 0x246   :  { %v837_v2 = vsel %vm836_vm11, %v835_v8, 0.0 }
 0x247   :  { %838 = vadd.xlane.f32.xlu1 %v837_v2 }
 0x2d4   :  { %v839_v23 = vpop.xlane.xlu1 %838 }
 0x2d5   :  { %v840_v25 = vmul.f32 0.5, %v839_v23 }
 0x2d7   :  { %v1055_v26 = vadd.f32 %v1054_v24, %v840_v25 }
 0x2d9   :  { %844 = vst.msk [vmem:[%s1319_s11] sm:$0xff] %vm843_vm12, %v1055_v26 }

</bundles_post_ra>
